<compile_context>
chip_gen: v7x
topology: tpu7x:2x2x1
jax: 0.10.0
libtpu: 0.0.40
codegen_flags: <defaults>
</compile_context>

<pallas_src>
import functools

import jax
import jax.numpy as jnp
from jax.experimental import pallas as pl
from jax.experimental.pallas import tpu as pltpu


def _linear_kernel(x_ref, w_ref, b_ref, o_ref):
    # One MXU matmul per batch tile + bias add; f32 accumulation.
    acc = jnp.dot(x_ref[...], w_ref[...], preferred_element_type=jnp.float32)
    o_ref[...] = (acc + b_ref[...]).astype(o_ref.dtype)


def _round_up(x, m):
    return ((x + m - 1) // m) * m


@functools.partial(jax.jit, static_argnames=("block_rows",))
def client_model_forward(x, weight, bias, *, block_rows=8192):
    """Pallas implementation of ClientModel.forward: y = x @ weight.T + bias.

    Args:
      x:      (B, input_size) float32
      weight: (out_features, input_size) float32  (PyTorch layout)
      bias:   (out_features,) float32
    Returns:
      (B, out_features) float32
    """
    B, D = x.shape
    out_features = weight.shape[0]

    # Unpadded operands: weight transposed to (D, out), bias as a (1, out) row.
    w_t = weight.T.astype(x.dtype)
    b2 = bias.reshape(1, out_features).astype(jnp.float32)

    # Batch tiling: big tiles to amortize per-step overhead; clamp for small B.
    # tb must be a multiple of 8 (sublane) -- round small B up, Pallas masks
    # the out-of-bounds rows of the (single / final) block.
    tb = min(block_rows, _round_up(B, 8))
    grid = (pl.cdiv(B, tb),)

    cost = pl.CostEstimate(
        flops=2 * B * D * out_features,
        transcendentals=0,
        bytes_accessed=4 * (B * D + B * out_features
                            + D * out_features + out_features),
    )

    out = pl.pallas_call(
        _linear_kernel,
        out_shape=jax.ShapeDtypeStruct((B, out_features), x.dtype),
        grid_spec=pl.GridSpec(
            grid=grid,
            in_specs=[
                pl.BlockSpec((tb, D), lambda i: (i, 0)),             # x tile
                pl.BlockSpec((D, out_features), lambda i: (0, 0)),   # W.T resident
                pl.BlockSpec((1, out_features), lambda i: (0, 0)),   # bias resident
            ],
            out_specs=pl.BlockSpec((tb, out_features), lambda i: (i, 0)),
        ),
        compiler_params=pltpu.CompilerParams(
            # Lets Mosaic shard batch tiles across v7x's 2 TCs; no-op on v5e/v6e.
            dimension_semantics=("parallel",),
        ),
        cost_estimate=cost,
    )(x, w_t, b2)

    return out


if __name__ == "__main__":
    # Small shapes consistent with the module: batch=8, input_size=32, out=4.
    batch, input_size, out_features = 8, 32, 4

    key = jax.random.PRNGKey(0)
    kx, kw, kb = jax.random.split(key, 3)

    # Deterministic PyTorch-style Linear init: U(-1/sqrt(in), 1/sqrt(in)).
    bound = 1.0 / (input_size ** 0.5)
    weight = jax.random.uniform(kw, (out_features, input_size),
                                minval=-bound, maxval=bound, dtype=jnp.float32)
    bias = jax.random.uniform(kb, (out_features,),
                              minval=-bound, maxval=bound, dtype=jnp.float32)
    x = jax.random.normal(kx, (batch, input_size), dtype=jnp.float32)

    y = client_model_forward(x, weight, bias)
    jax.block_until_ready(y)

    # Reference check against plain JAX (same math as torch nn.Linear).
    y_ref = x @ weight.T + bias
    assert y.shape == (batch, out_features)
    assert jnp.allclose(y, y_ref, atol=1e-5, rtol=1e-5)

    # Exercise the multi-tile path with a ragged final block (no padding copy).
    big_b = 2048 + 37
    xb = jax.random.normal(kx, (big_b, input_size), dtype=jnp.float32)
    yb = client_model_forward(xb, weight, bias, block_rows=512)
    jax.block_until_ready(yb)
    assert yb.shape == (big_b, out_features)
    assert jnp.allclose(yb, xb @ weight.T + bias, atol=1e-5, rtol=1e-5)

    print("KERNEL_OK")
</pallas_src>

<mosaic_0001>
module attributes {stable_mosaic.version = 11 : i64} {
  func.func @_linear_kernel(%arg0: i32, %arg1: memref<8x32xf32, #tpu.memory_space<vmem>>, %arg2: memref<32x4xf32, #tpu.memory_space<vmem>>, %arg3: memref<1x4xf32, #tpu.memory_space<vmem>>, %arg4: memref<8x4xf32, #tpu.memory_space<vmem>>) attributes {dimension_semantics = [#tpu.dimension_semantics<parallel>], iteration_bounds = array<i64: 1>, scalar_prefetch = 0 : i64, scratch_operands = 0 : i64, tpu.core_type = #tpu.core_type<tc>, window_params = [{transform_indices = @transform_0, window_bounds = array<i64: 8, 32>}, {pipeline_mode = #tpu.pipeline_mode<synchronous>, transform_indices = @transform_1, window_bounds = array<i64: 32, 4>}, {pipeline_mode = #tpu.pipeline_mode<synchronous>, transform_indices = @transform_2, window_bounds = array<i64: 1, 4>}, {transform_indices = @transform_3, window_bounds = array<i64: 8, 4>}]} {
    %c0 = arith.constant 0 : index
    %c0_0 = arith.constant 0 : index
    %0 = vector.load %arg1[%c0, %c0_0] : memref<8x32xf32, #tpu.memory_space<vmem>>, vector<8x32xf32>
    %c0_1 = arith.constant 0 : index
    %c0_2 = arith.constant 0 : index
    %1 = vector.load %arg2[%c0_1, %c0_2] : memref<32x4xf32, #tpu.memory_space<vmem>>, vector<32x4xf32>
    %cst = arith.constant dense<0.000000e+00> : vector<8x4xf32>
    %2 = tpu.matmul %0, %1, %cst {dimension_numbers = #tpu.dot_dimension_numbers<[1], [0], [0], [1], [0, 0, 1, 1], [], []>} : vector<8x32xf32>, vector<32x4xf32>, vector<8x4xf32> -> vector<8x4xf32>
    %c0_3 = arith.constant 0 : index
    %c0_4 = arith.constant 0 : index
    %3 = vector.load %arg3[%c0_3, %c0_4] : memref<1x4xf32, #tpu.memory_space<vmem>>, vector<1x4xf32>
    %4 = vector.broadcast %3 : vector<1x4xf32> to vector<8x4xf32>
    %5 = arith.addf %2, %4 : vector<8x4xf32>
    %c0_5 = arith.constant 0 : index
    %c0_6 = arith.constant 0 : index
    %6 = vector.load %arg4[%c0_5, %c0_6] : memref<8x4xf32, #tpu.memory_space<vmem>>, vector<8x4xf32>
    tpu.vector_store %arg4[%c0_5, %c0_6], %5 {strides = array<i32>} : memref<8x4xf32, #tpu.memory_space<vmem>>, vector<8x4xf32>,
    return
  }
  func.func @transform_0(%arg0: i32) -> (i32, i32) {
    %c0_i32 = arith.constant 0 : i32
    %c0_i32_0 = arith.constant 0 : i32
    return %arg0, %c0_i32 : i32, i32
  }
  func.func @transform_1(%arg0: i32) -> (i32, i32) {
    %c0_i32 = arith.constant 0 : i32
    %c0_i32_0 = arith.constant 0 : i32
    %c0_i32_1 = arith.constant 0 : i32
    return %c0_i32, %c0_i32_0 : i32, i32
  }
  func.func @transform_2(%arg0: i32) -> (i32, i32) {
    %c0_i32 = arith.constant 0 : i32
    %c0_i32_0 = arith.constant 0 : i32
    %c0_i32_1 = arith.constant 0 : i32
    return %c0_i32, %c0_i32_0 : i32, i32
  }
  func.func @transform_3(%arg0: i32) -> (i32, i32) {
    %c0_i32 = arith.constant 0 : i32
    %c0_i32_0 = arith.constant 0 : i32
    return %arg0, %c0_i32 : i32, i32
  }
}

</mosaic_0001>

<bundles_post_ra>
// kernel: client_model_forward.1
= control target key start
LH: loop header
LB: loop body
LE: loop exit
PB: predicated region body
PF: predicated region fallthrough
CT: control target
= control target key end

     0   :  { %v133_v0 = vmov 0.0|0.0   ;;  %vm134_vm0 = vmmov 0   ;;  %v135_v4 = vmov 0.0   ;;  %vm26_vm1 = vcmask 261120   ;;  %s177_s1 = inlined_call_operand.vmem [shape: f32[32,4], index: 1, kind: input, shape index: {}]   ;;  %s178_s0 = inlined_call_operand.vmem [shape: f32[8,32], index: 0, kind: input, shape index: {}]   ;;  %s179_s2 = inlined_call_operand.vmem [shape: f32[1,4], index: 2, kind: input, shape index: {}]   ;;  %s180_s3 = inlined_call_operand.vmem [shape: f32[8,4], index: 3, kind: output, shape index: {}]  }
   0x1   :  { %124 = vmatprep.subr.bf16.mxu0 %v133_v0  ;;  %v15_v1 = vld [vmem:[%s177_s1] sm:$0xff]  ;;  %v16_v2 = vld [vmem:[%s177_s1 + $0x8] sm:$0xff]  ;;  %v17_v3 = vld [vmem:[%s177_s1 + $0x10] sm:$0xff]  ;;  %121 = vmatprep.mubr.msk.f32.mxu0 %vm134_vm0, %v135_v4  ;;  %vm100_vm2 = vcmask 31744  }
   0x2   :  { %v125_v5 = vpack.c.bf16 %v16_v2, %v15_v1  ;;  %v18_v6 = vld [vmem:[%s177_s1 + $0x18] sm:$0xff]  ;;  %v14_v8 = vld [vmem:[%s178_s0] sm:$0xff] }
   0x3   :  { %v128_v7 = vpack.c.bf16 %v18_v6, %v17_v3  ;;  %v106_v9 = vld [vmem:[%s179_s2] ss:$0 sm:$0xff] }
   0x4   :  { %126 = vmatpush3.bf16.msra.mxu0 %v125_v5 }
   0x5   :  { %127 = vmatprep.subr.bf16.mxu0 %v133_v0 }
   0x8   :  { %129 = vmatpush3.bf16.msra.mxu0 %v128_v7 }
   0xb   :  { %122 = vmatmul.mubr.msk.f32.vlgmr.msra.gmra.mrb[0].mxu0 %vm26_vm1, %v14_v8 }
  0xde   :  { %v96_v10 = vpop.f32.mrb[0].mxu0 }
  0xdf   :  { %v97_v11 = vadd.f32 %v106_v9, %v96_v10  ;;  %v123_v12 = vpop.f32.mrb[1].mxu0 }
  0xe1   :  { %101 = vst.msk [vmem:[%s180_s3] sm:$0xff] %vm100_vm2, %v97_v11 }

</bundles_post_ra>
